<compile_context>
chip_gen: v5e
topology: v5e:2x2
jax: 0.10.0
libtpu: 0.0.40
codegen_flags: <defaults>
</compile_context>

<pallas_src>
import functools

import jax
import jax.numpy as jnp
from jax.experimental import pallas as pl
from jax.experimental.pallas import tpu as pltpu


def _mlp_kernel(t_ref, c_ref,
                w1_ref, b1_ref,
                w2_ref, b2_ref,
                w3_ref, b3_ref,
                w4_ref, b4_ref,
                o_ref, *, compute_dtype):
    # Batch on lanes, features on sublanes.
    t = t_ref[...]                 # (1, TB) f32
    c0 = c_ref[0:1, :]             # (1, TB)
    c1 = c_ref[1:2, :]             # (1, TB)

    # ---- Layer 1 (3 -> 128): VPU broadcast FMAs (keeps the MXU free). ----
    h1 = (w1_ref[:, 0:1] * t
          + w1_ref[:, 1:2] * c0
          + w1_ref[:, 2:3] * c1
          + b1_ref[...])                                     # (128, TB) f32
    h1 = jnp.maximum(h1, 0.0).astype(compute_dtype)

    # ---- Layer 2 (128 -> 64): MXU matmul, f32 accumulation. ----
    h2 = jnp.dot(w2_ref[...], h1, preferred_element_type=jnp.float32)
    h2 = jnp.maximum(h2 + b2_ref[...], 0.0).astype(compute_dtype)   # (64, TB)

    # ---- Layer 3 (64 -> 32): MXU matmul. ----
    h3 = jnp.dot(w3_ref[...], h2, preferred_element_type=jnp.float32)
    h3 = jnp.maximum(h3 + b3_ref[...], 0.0)                  # (32, TB) f32

    # ---- Layer 4 (32 -> 1): VPU multiply + sublane (XLU) reduction. ----
    out = jnp.sum(h3 * w4_ref[...], axis=0, keepdims=True) + b4_ref[...]
    o_ref[...] = out.astype(o_ref.dtype)                     # (1, TB) lane-dense


def response_model_forward(treatment, covariate, params, *,
                           block_b=1024, compute_dtype=jnp.bfloat16):
    """treatment: (B, 1), covariate: (B, 2) -> (B, 1)."""
    B = treatment.shape[0]
    treatment = treatment.reshape(B, 1).astype(jnp.float32)
    covariate = covariate.reshape(B, 2).astype(jnp.float32)

    assert block_b % 128 == 0, "block_b must be a multiple of 128 (lane width)"
    # Clamp the tile so tiny batches are not padded all the way to block_b.
    tb = min(block_b, pl.cdiv(B, 128) * 128)
    n_tiles = pl.cdiv(B, tb)
    bp = n_tiles * tb
    pad = bp - B
    if pad:  # ragged batch: zero-pad, slice the result back afterwards
        treatment = jnp.pad(treatment, ((0, pad), (0, 0)))
        covariate = jnp.pad(covariate, ((0, pad), (0, 0)))

    # Batch onto the lane axis: (Bp,1)->(1,Bp) is a free reshape; the covariate
    # needs one small transpose (cheaper than the removed (B,3) concat pass).
    t_row = treatment.reshape(1, bp)          # (1, Bp)
    c_rows = covariate.T                      # (2, Bp)

    w1, b1, w2, b2, w3, b3, w4, b4 = params
    w2c = w2.astype(compute_dtype)            # MXU operands only
    w3c = w3.astype(compute_dtype)            # (biases stay f32)

    full = lambda a: pl.BlockSpec(a.shape, lambda i: (0, 0))
    kernel = functools.partial(_mlp_kernel, compute_dtype=compute_dtype)

    out = pl.pallas_call(
        kernel,
        out_shape=jax.ShapeDtypeStruct((1, bp), jnp.float32),
        grid_spec=pl.GridSpec(
            grid=(n_tiles,),
            in_specs=[
                pl.BlockSpec((1, tb), lambda i: (0, i)),   # treatment row
                pl.BlockSpec((2, tb), lambda i: (0, i)),   # covariate rows
                full(w1), full(b1),
                full(w2c), full(b2),
                full(w3c), full(b3),
                full(w4), full(b4),
            ],
            out_specs=pl.BlockSpec((1, tb), lambda i: (0, i)),
        ),
        compiler_params=pltpu.CompilerParams(
            dimension_semantics=("parallel",),
            vmem_limit_bytes=32 * 1024 * 1024),
    )(t_row, c_rows, w1, b1, w2c, b2, w3c, b3, w4, b4)

    return out[:, :B].reshape(B, 1)


def init_params(key):
    """PyTorch-style init (U(-1/sqrt(fan_in), 1/sqrt(fan_in))).

    Weights are stored in the torch (out_features, in_features) layout, which
    is exactly what the transposed (feature-on-sublane) kernel consumes.
    Biases are stored as (out_features, 1) columns; the last weight is kept as
    a (32, 1) column for the VPU reduce.
    """
    dims = [(3, 128), (128, 64), (64, 32), (32, 1)]
    params = []
    for idx, (fan_in, fan_out) in enumerate(dims):
        kw, kb = jax.random.split(jax.random.fold_in(key, idx))
        bound = 1.0 / (fan_in ** 0.5)
        w = jax.random.uniform(kw, (fan_out, fan_in), jnp.float32, -bound, bound)
        b = jax.random.uniform(kb, (fan_out, 1), jnp.float32, -bound, bound)
        params += [w, b]
    w1, b1, w2, b2, w3, b3, w4, b4 = params
    return (w1, b1, w2, b2, w3, b3, w4.T, b4)   # w4 stored (32, 1)


def _reference_forward(treatment, covariate, params):
    """Plain-JAX reference (exact f32 matmuls) for correctness checking."""
    w1, b1, w2, b2, w3, b3, w4t, b4 = params
    x = jnp.concatenate([treatment, covariate], axis=1)      # (B, 3)
    with jax.default_matmul_precision("float32"):
        h = jnp.maximum(x @ w1.T + b1[:, 0], 0.0)
        h = jnp.maximum(h @ w2.T + b2[:, 0], 0.0)
        h = jnp.maximum(h @ w3.T + b3[:, 0], 0.0)
        return h @ w4t + b4[0, 0]


if __name__ == "__main__":
    key = jax.random.PRNGKey(0)
    k_t, k_c, k_p = jax.random.split(key, 3)

    B = 300  # deliberately ragged: exercises batch padding / tail handling
    treatment = jax.random.normal(k_t, (B, 1), jnp.float32)
    covariate = jax.random.normal(k_c, (B, 2), jnp.float32)
    params = init_params(k_p)

    ref = _reference_forward(treatment, covariate, params)

    # f32 path: tight check against the exact-f32 reference.
    out_f32 = response_model_forward(treatment, covariate, params,
                                     block_b=128, compute_dtype=jnp.float32)
    out_f32 = jax.block_until_ready(out_f32)
    assert out_f32.shape == (B, 1)
    assert jnp.allclose(out_f32, ref, atol=2e-3, rtol=2e-3), "f32 mismatch vs reference"

    # bf16 (default perf) path: looser tolerance for bf16 MXU operands.
    out_bf16 = response_model_forward(treatment, covariate, params,
                                      block_b=128, compute_dtype=jnp.bfloat16)
    out_bf16 = jax.block_until_ready(out_bf16)
    assert out_bf16.shape == (B, 1)
    assert jnp.allclose(out_bf16, ref, atol=3e-2, rtol=3e-2), "bf16 mismatch vs reference"

    print("KERNEL_OK")
</pallas_src>

<mosaic_0001>
module attributes {stable_mosaic.version = 11 : i64} {
  func.func @_mlp_kernel(%arg0: i32, %arg1: memref<1x128xf32, #tpu.memory_space<vmem>>, %arg2: memref<2x128xf32, #tpu.memory_space<vmem>>, %arg3: memref<128x3xf32, #tpu.memory_space<vmem>>, %arg4: memref<128x1xf32, #tpu.memory_space<vmem>>, %arg5: memref<64x128xf32, #tpu.memory_space<vmem>>, %arg6: memref<64x1xf32, #tpu.memory_space<vmem>>, %arg7: memref<32x64xf32, #tpu.memory_space<vmem>>, %arg8: memref<32x1xf32, #tpu.memory_space<vmem>>, %arg9: memref<32x1xf32, #tpu.memory_space<vmem>>, %arg10: memref<1x1xf32, #tpu.memory_space<vmem>>, %arg11: memref<1x128xf32, #tpu.memory_space<vmem>>) attributes {dimension_semantics = [#tpu.dimension_semantics<parallel>], iteration_bounds = array<i64: 3>, scalar_prefetch = 0 : i64, scratch_operands = 0 : i64, tpu.core_type = #tpu.core_type<tc>, window_params = [{transform_indices = @transform_0, window_bounds = array<i64: 1, 128>}, {transform_indices = @transform_1, window_bounds = array<i64: 2, 128>}, {pipeline_mode = #tpu.pipeline_mode<synchronous>, transform_indices = @transform_2, window_bounds = array<i64: 128, 3>}, {pipeline_mode = #tpu.pipeline_mode<synchronous>, transform_indices = @transform_3, window_bounds = array<i64: 128, 1>}, {pipeline_mode = #tpu.pipeline_mode<synchronous>, transform_indices = @transform_4, window_bounds = array<i64: 64, 128>}, {pipeline_mode = #tpu.pipeline_mode<synchronous>, transform_indices = @transform_5, window_bounds = array<i64: 64, 1>}, {pipeline_mode = #tpu.pipeline_mode<synchronous>, transform_indices = @transform_6, window_bounds = array<i64: 32, 64>}, {pipeline_mode = #tpu.pipeline_mode<synchronous>, transform_indices = @transform_7, window_bounds = array<i64: 32, 1>}, {pipeline_mode = #tpu.pipeline_mode<synchronous>, transform_indices = @transform_8, window_bounds = array<i64: 32, 1>}, {pipeline_mode = #tpu.pipeline_mode<synchronous>, transform_indices = @transform_9, window_bounds = array<i64: 1, 1>}, {transform_indices = @transform_10, window_bounds = array<i64: 1, 128>}]} {
    %c0 = arith.constant 0 : index
    %c0_0 = arith.constant 0 : index
    %0 = vector.load %arg1[%c0, %c0_0] : memref<1x128xf32, #tpu.memory_space<vmem>>, vector<1x128xf32>
    %c0_1 = arith.constant 0 : index
    %c0_2 = arith.constant 0 : index
    %1 = vector.load %arg2[%c0_1, %c0_2] : memref<2x128xf32, #tpu.memory_space<vmem>>, vector<1x128xf32>
    %c1 = arith.constant 1 : index
    %c0_3 = arith.constant 0 : index
    %2 = vector.load %arg2[%c1, %c0_3] : memref<2x128xf32, #tpu.memory_space<vmem>>, vector<1x128xf32>
    %c0_4 = arith.constant 0 : index
    %c0_5 = arith.constant 0 : index
    %3 = vector.load %arg3[%c0_4, %c0_5] : memref<128x3xf32, #tpu.memory_space<vmem>>, vector<128x1xf32>
    %4 = vector.broadcast %3 : vector<128x1xf32> to vector<128x128xf32>
    %5 = vector.broadcast %0 : vector<1x128xf32> to vector<128x128xf32>
    %6 = arith.mulf %4, %5 : vector<128x128xf32>
    %c0_6 = arith.constant 0 : index
    %c1_7 = arith.constant 1 : index
    %7 = vector.load %arg3[%c0_6, %c1_7] : memref<128x3xf32, #tpu.memory_space<vmem>>, vector<128x1xf32>
    %8 = vector.broadcast %7 : vector<128x1xf32> to vector<128x128xf32>
    %9 = vector.broadcast %1 : vector<1x128xf32> to vector<128x128xf32>
    %10 = arith.mulf %8, %9 : vector<128x128xf32>
    %11 = arith.addf %6, %10 : vector<128x128xf32>
    %c0_8 = arith.constant 0 : index
    %c2 = arith.constant 2 : index
    %12 = vector.load %arg3[%c0_8, %c2] : memref<128x3xf32, #tpu.memory_space<vmem>>, vector<128x1xf32>
    %13 = vector.broadcast %12 : vector<128x1xf32> to vector<128x128xf32>
    %14 = vector.broadcast %2 : vector<1x128xf32> to vector<128x128xf32>
    %15 = arith.mulf %13, %14 : vector<128x128xf32>
    %16 = arith.addf %11, %15 : vector<128x128xf32>
    %c0_9 = arith.constant 0 : index
    %c0_10 = arith.constant 0 : index
    %17 = vector.load %arg4[%c0_9, %c0_10] : memref<128x1xf32, #tpu.memory_space<vmem>>, vector<128x1xf32>
    %18 = vector.broadcast %17 : vector<128x1xf32> to vector<128x128xf32>
    %19 = arith.addf %16, %18 : vector<128x128xf32>
    %cst = arith.constant 0.000000e+00 : f32
    %20 = vector.broadcast %cst : f32 to vector<128x128xf32>
    %21 = arith.maximumf %19, %20 : vector<128x128xf32>
    %c0_11 = arith.constant 0 : index
    %c0_12 = arith.constant 0 : index
    %22 = vector.load %arg5[%c0_11, %c0_12] : memref<64x128xf32, #tpu.memory_space<vmem>>, vector<64x128xf32>
    %cst_13 = arith.constant dense<0.000000e+00> : vector<64x128xf32>
    %23 = tpu.matmul %22, %21, %cst_13 {dimension_numbers = #tpu.dot_dimension_numbers<[1], [0], [0], [1], [0, 0, 1, 1], [], []>} : vector<64x128xf32>, vector<128x128xf32>, vector<64x128xf32> -> vector<64x128xf32>
    %c0_14 = arith.constant 0 : index
    %c0_15 = arith.constant 0 : index
    %24 = vector.load %arg6[%c0_14, %c0_15] : memref<64x1xf32, #tpu.memory_space<vmem>>, vector<64x1xf32>
    %25 = vector.broadcast %24 : vector<64x1xf32> to vector<64x128xf32>
    %26 = arith.addf %23, %25 : vector<64x128xf32>
    %cst_16 = arith.constant 0.000000e+00 : f32
    %27 = vector.broadcast %cst_16 : f32 to vector<64x128xf32>
    %28 = arith.maximumf %26, %27 : vector<64x128xf32>
    %c0_17 = arith.constant 0 : index
    %c0_18 = arith.constant 0 : index
    %29 = vector.load %arg7[%c0_17, %c0_18] : memref<32x64xf32, #tpu.memory_space<vmem>>, vector<32x64xf32>
    %cst_19 = arith.constant dense<0.000000e+00> : vector<32x128xf32>
    %30 = tpu.matmul %29, %28, %cst_19 {dimension_numbers = #tpu.dot_dimension_numbers<[1], [0], [0], [1], [0, 0, 1, 1], [], []>} : vector<32x64xf32>, vector<64x128xf32>, vector<32x128xf32> -> vector<32x128xf32>
    %c0_20 = arith.constant 0 : index
    %c0_21 = arith.constant 0 : index
    %31 = vector.load %arg8[%c0_20, %c0_21] : memref<32x1xf32, #tpu.memory_space<vmem>>, vector<32x1xf32>
    %32 = vector.broadcast %31 : vector<32x1xf32> to vector<32x128xf32>
    %33 = arith.addf %30, %32 : vector<32x128xf32>
    %cst_22 = arith.constant 0.000000e+00 : f32
    %34 = vector.broadcast %cst_22 : f32 to vector<32x128xf32>
    %35 = arith.maximumf %33, %34 : vector<32x128xf32>
    %c0_23 = arith.constant 0 : index
    %c0_24 = arith.constant 0 : index
    %36 = vector.load %arg9[%c0_23, %c0_24] : memref<32x1xf32, #tpu.memory_space<vmem>>, vector<32x1xf32>
    %37 = vector.broadcast %36 : vector<32x1xf32> to vector<32x128xf32>
    %38 = arith.mulf %35, %37 : vector<32x128xf32>
    %cst_25 = arith.constant dense<0.000000e+00> : vector<128xf32>
    %39 = vector.multi_reduction <add>, %38, %cst_25 [0] : vector<32x128xf32> to vector<128xf32>
    %40 = vector.shape_cast %39 : vector<128xf32> to vector<1x128xf32>
    %c0_26 = arith.constant 0 : index
    %c0_27 = arith.constant 0 : index
    %41 = vector.load %arg10[%c0_26, %c0_27] : memref<1x1xf32, #tpu.memory_space<vmem>>, vector<1x1xf32>
    %42 = vector.broadcast %41 : vector<1x1xf32> to vector<1x128xf32>
    %43 = arith.addf %40, %42 : vector<1x128xf32>
    %c0_28 = arith.constant 0 : index
    %c0_29 = arith.constant 0 : index
    %44 = vector.load %arg11[%c0_28, %c0_29] : memref<1x128xf32, #tpu.memory_space<vmem>>, vector<1x128xf32>
    tpu.vector_store %arg11[%c0_28, %c0_29], %43 {strides = array<i32>} : memref<1x128xf32, #tpu.memory_space<vmem>>, vector<1x128xf32>,
    return
  }
  func.func @transform_0(%arg0: i32) -> (i32, i32) {
    %c0_i32 = arith.constant 0 : i32
    %c0_i32_0 = arith.constant 0 : i32
    return %c0_i32, %arg0 : i32, i32
  }
  func.func @transform_1(%arg0: i32) -> (i32, i32) {
    %c0_i32 = arith.constant 0 : i32
    %c0_i32_0 = arith.constant 0 : i32
    return %c0_i32, %arg0 : i32, i32
  }
  func.func @transform_2(%arg0: i32) -> (i32, i32) {
    %c0_i32 = arith.constant 0 : i32
    %c0_i32_0 = arith.constant 0 : i32
    %c0_i32_1 = arith.constant 0 : i32
    return %c0_i32, %c0_i32_0 : i32, i32
  }
  func.func @transform_3(%arg0: i32) -> (i32, i32) {
    %c0_i32 = arith.constant 0 : i32
    %c0_i32_0 = arith.constant 0 : i32
    %c0_i32_1 = arith.constant 0 : i32
    return %c0_i32, %c0_i32_0 : i32, i32
  }
  func.func @transform_4(%arg0: i32) -> (i32, i32) {
    %c0_i32 = arith.constant 0 : i32
    %c0_i32_0 = arith.constant 0 : i32
    %c0_i32_1 = arith.constant 0 : i32
    return %c0_i32, %c0_i32_0 : i32, i32
  }
  func.func @transform_5(%arg0: i32) -> (i32, i32) {
    %c0_i32 = arith.constant 0 : i32
    %c0_i32_0 = arith.constant 0 : i32
    %c0_i32_1 = arith.constant 0 : i32
    return %c0_i32, %c0_i32_0 : i32, i32
  }
  func.func @transform_6(%arg0: i32) -> (i32, i32) {
    %c0_i32 = arith.constant 0 : i32
    %c0_i32_0 = arith.constant 0 : i32
    %c0_i32_1 = arith.constant 0 : i32
    return %c0_i32, %c0_i32_0 : i32, i32
  }
  func.func @transform_7(%arg0: i32) -> (i32, i32) {
    %c0_i32 = arith.constant 0 : i32
    %c0_i32_0 = arith.constant 0 : i32
    %c0_i32_1 = arith.constant 0 : i32
    return %c0_i32, %c0_i32_0 : i32, i32
  }
  func.func @transform_8(%arg0: i32) -> (i32, i32) {
    %c0_i32 = arith.constant 0 : i32
    %c0_i32_0 = arith.constant 0 : i32
    %c0_i32_1 = arith.constant 0 : i32
    return %c0_i32, %c0_i32_0 : i32, i32
  }
  func.func @transform_9(%arg0: i32) -> (i32, i32) {
    %c0_i32 = arith.constant 0 : i32
    %c0_i32_0 = arith.constant 0 : i32
    %c0_i32_1 = arith.constant 0 : i32
    return %c0_i32, %c0_i32_0 : i32, i32
  }
  func.func @transform_10(%arg0: i32) -> (i32, i32) {
    %c0_i32 = arith.constant 0 : i32
    %c0_i32_0 = arith.constant 0 : i32
    return %c0_i32, %arg0 : i32, i32
  }
}

</mosaic_0001>

<bundles_post_ra>
// kernel: tpu_custom_call.1
= control target key start
LH: loop header
LB: loop body
LE: loop exit
PB: predicated region body
PF: predicated region fallthrough
CT: control target
= control target key end

     0   :  { %s1817_s0 = inlined_call_operand.vmem [shape: f32[1,384], index: 0, kind: input, shape index: {}]   ;;  %s1818_s1 = inlined_call_operand.vmem [shape: f32[2,384], index: 1, kind: input, shape index: {}]   ;;  %s1819_s2 = inlined_call_operand.vmem [shape: f32[128,3], index: 2, kind: input, shape index: {}]   ;;  %s1820_s3 = inlined_call_operand.vmem [shape: f32[128,1], index: 3, kind: input, shape index: {}]   ;;  %s1821_s4 = inlined_call_operand.vmem [shape: f32[64,128], index: 4, kind: input, shape index: {}]   ;;  %s1822_s5 = inlined_call_operand.vmem [shape: f32[64,1], index: 5, kind: input, shape index: {}]   ;;  %s1823_s6 = inlined_call_operand.vmem [shape: f32[32,64], index: 6, kind: input, shape index: {}]   ;;  %s1824_s7 = inlined_call_operand.vmem [shape: f32[32,1], index: 7, kind: input, shape index: {}]   ;;  %s1825_s8 = inlined_call_operand.vmem [shape: f32[32,1], index: 8, kind: input, shape index: {}]   ;;  %s1826_s9 = inlined_call_operand.<no memory space> [shape: f32[1,1], index: 9, kind: input, shape index: {}]   ;;  %s1827_s10 = inlined_call_operand.hbm [shape: f32[1,384], index: 10, kind: output, shape index: {}]  }
   0x1   :  { %v15_v0 = vstv %s1826_s9 }
   0x2   :  { %16 = vst [vmem:[#allocation2] sm:$0x1] %v15_v0 }
   0x3   :  { %17 = vsyncpa [#allocation4], 0 }
   0x4   :  { %19 = vsyncpa [#allocation4 + $0x1], 0  ;;  %s1352_s15 = smov 0   ;;  %s1354_s16 = smov 0  }
   0x5   :  { %s1356_s17 = smov 0   ;;  %s1358_s18 = smov 0  }
   0x6 LB: > { %1829 = sst [smem:[#allocation6_spill]] %s1285_s17  ;;  %s1373_s9 = sadd.s32 4294967295, %s1289_s18   ;;  %s1289_s18 = sphi %s1358_s18, %s1837_s18   ;;  %s1285_s17 = sphi %s1356_s17, %s1834_s17   ;;  %s1281_s16 = sphi %s1354_s16, %s1836_s16   ;;  %s1277_s15 = sphi %s1352_s15, %s1835_s15  }
   0x7   : > { %s1112_s19 = sadd.s32 4294967294, %s1289_s18   ;;  %s1377_s20 = sadd.s32 1, %s1289_s18  }
   0x8   : > { %s252_s21 = sadd.s32 1, %s1285_s17  ;;  %s249_s22 = ssub.s32 %s1289_s18, %s1377_s20 }
   0x9   : > { %p262_p0 = scmp.ne.s32.totalorder %s1285_s17, %s1281_s16  ;;  %p250_p1 = scmp.eq.s32.totalorder %s249_s22, 0 }
   0xa   : > { %p263_p2 = scmp.eq.s32.totalorder %s1373_s9, 2  ;;  %p268_p3 = scmp.ne.s32.totalorder %s1281_s16, %s1277_s15 }
   0xb   : > { %p269_p4 = scmp.eq.s32.totalorder %s1112_s19, 2  ;;  %p1115_p7 = scmp.ge.s32.totalorder %s1289_s18, 1 }
   0xc   : > { %s1388_s23 = scalar_select %p250_p1, %s1285_s17, %s252_s21  }
   0xd   : > { %p1390_p5 = por %p263_p2, %p262_p0  ;;  %p1394_p6 = por %p269_p4, %p268_p3 }
   0xe   : > { %1830 = sst [smem:[#allocation7_spill]] %s1388_s23  ;;  %p324_p8 = scmp.lt.s32.totalorder %s1289_s18, 4 }
  0x10   : > { %p325_p9 = pnand %p1115_p7, %p324_p8 }
  0x11   : > { %p363_p10 = scmp.lt.s32.totalorder (!%p325_p9), %s1373_s9, 2  ;;  %s1044_s11 = scalar_lea.hbm (!%p325_p9), %s1827_s10, %s1373_s9 }
  0x12   : > { %328 = sbr.rel (%p325_p9) target bundleno = 686 (0x2ae), region = 60  ;;  %s1048_s13 = sshll.u32 (!%p325_p9), %s1044_s11, 4  ;;  %s1049_s13 = int_to_ptr.hbm [resolvable:$true] %s1048_s13 }
  0x13   : > { %s1247_s28 = scalar_lea.hbm (!%p325_p9), %s1827_s10, 3 }
  0x17   : > { %v388_v1 = vld [vmem:[%s1819_s2 + $0x78] sm:$0xff]  ;;  %v1406_v2 = vld [vmem:[%s1819_s2 + $0x20] sm:$0xff]  ;;  %v1411_v3 = vld [vmem:[%s1819_s2 + $0x10] sm:$0xff]  ;;  %v1291_v4 = vmov 1   ;;  %v1292_v5 = vmov 0   ;;  %s1418_s12 = scalar_select %p363_p10, %s1373_s9, 2 }
  0x18   : > { %1199 = vset.pattern.permute.xlu0 %v1291_v4  ;;  %1198 = vset.pattern.permute.xlu2 %v1292_v5  ;;  %v386_v6 = vld [vmem:[%s1819_s2 + $0x68] sm:$0xff]  ;;  %v1443_v8 = vld [vmem:[%s1819_s2 + $0x18] sm:$0xff]  ;;  %v385_v9 = vld [vmem:[%s1819_s2 + $0x60] sm:$0xff]  ;;  %v1293_v15 = vmov 2   ;;  %vm943_vm0 = vcmask 523264  }
  0x19   : > { %1197 = vset.pattern.permute.xlu1 %v1292_v5  ;;  %549 = vperm.xlu0 %1199, %v388_v1   ;;  %s365_s19 = scalar_lea.vmem %s1817_s0, %s1418_s12  ;;  %s1116_s21 = sshll.u32 %s1418_s12, 1  ;;  %v1438_v7 = vld [vmem:[%s1819_s2 + $0x28] sm:$0xff]  ;;  %v1453_v10 = vld [vmem:[%s1819_s2 + $0x40] sm:$0xff]  ;;  %v1458_v11 = vld [vmem:[%s1819_s2 + $0x38] sm:$0xff] }
  0x1a   : > { %411 = vperm.xlu2 %1198, %v1406_v2   ;;  %401 = vperm.xlu1 %1197, %v1411_v3   ;;  %s1430_s27 = scalar_lea.vmem %s1818_s1, %s1116_s21  ;;  %v383_v12 = vld [vmem:[%s1819_s2 + $0x50] sm:$0xff]  ;;  %v1474_v14 = vld [vmem:[%s1819_s2] sm:$0xff]  ;;  %v1483_v16 = vld [vmem:[%s1819_s2 + $0x8] sm:$0xff]  ;;  %s1241_s21 = sshra.s32 %s1049_s13, 4  ;;  %s1242_s21 = int_to_ptr.hbm [resolvable:$true] %s1241_s21 }
  0x1b   : > { %v387_v13 = vld [vmem:[%s1819_s2 + $0x70] sm:$0xff]  ;;  %v697_v18 = vld [vmem:[%s1820_s3 + $0x78] sm:$0xff]  ;;  %v382_v19 = vld [vmem:[%s1819_s2 + $0x48] sm:$0xff]  ;;  %s1243_s22 = scalar_lea.hbm %s1242_s21, 1  ;;  %p1248_p0 = scmp.lt.s32.totalorder %s1242_s21, %s1827_s10 }
  0x1c   : > { %v379_v17 = vld [vmem:[%s1819_s2 + $0x30] sm:$0xff]  ;;  %v384_v20 = vld [vmem:[%s1819_s2 + $0x58] sm:$0xff]  ;;  %v695_v23 = vld [vmem:[%s1820_s3 + $0x68] sm:$0xff]  ;;  %p1244_p11 = scmp.ne.s32.totalorder %s1242_s21, %s1243_s22  ;;  %p1249_p1 = scmp.lt.s32.totalorder %s1247_s28, %s1243_s22 }
  0x1d   : > { %v696_v21 = vld [vmem:[%s1820_s3 + $0x70] sm:$0xff]  ;;  %v687_v24 = vld [vmem:[%s1820_s3 + $0x28] sm:$0xff]  ;;  %v694_v26 = vld [vmem:[%s1820_s3 + $0x60] sm:$0xff] }
  0x1e   : > { %v692_v22 = vld [vmem:[%s1820_s3 + $0x50] sm:$0xff]  ;;  %v693_v28 = vld [vmem:[%s1820_s3 + $0x58] sm:$0xff]  ;;  %v691_v36 = vld [vmem:[%s1820_s3 + $0x48] sm:$0xff]  ;;  %p1245_p12 = pnand %p1244_p11, %p1390_p5  ;;  %p1250_p2 = por %p1249_p1, %p1248_p0 }
  0x1f   : > { %v682_v37 = vld [vmem:[%s1820_s3] sm:$0xff]  ;;  %v821_v42 = vld [vmem:[%s1822_s5 + $0x18] sm:$0xff]  ;;  %v688_v59 = vld [vmem:[%s1820_s3 + $0x30] sm:$0xff] }
  0x20   : > { %v690_v40 = vld [vmem:[%s1820_s3 + $0x40] sm:$0xff]  ;;  %v689_v52 = vld [vmem:[%s1820_s3 + $0x38] sm:$0xff]  ;;  %v921_v60 = vld [vmem:[%s1824_s7 + $0x10] sm:$0xff]  ;;  %p1246_p13 = pneg %p1245_p12 }
  0x21   : > { %541 = vperm.xlu0 %1199, %v386_v6   ;;  %v1566_v43 = vld [vmem:[%s365_s19] ss:$0 sm:$0xff]  ;;  %v1603_v63 = vld [vmem:[%s1430_s27 + $0x1] ss:$0 sm:$0xff] }
  0x22   : > { %416 = vperm.xlu2 %1198, %v1438_v7   ;;  %406 = vperm.xlu1 %1197, %v1443_v8   ;;  %v1570_v44 = vld [vmem:[%s1430_s27] ss:$0 sm:$0xff]  ;;  %s361_s27 = sand.u32 1, %s1281_s16   ;;  %p1251_p3 = pnand %p1250_p2, %p1246_p13 }
  0x23   : > { %v818_v51 = vld [vmem:[%s1822_s5] sm:$0xff]  ;;  %s362_s12 = scalar_lea.vmem [#allocation3], %s361_s27  ;;  %s1036_s14 = scalar_lea.sflag [#allocation4], %s361_s27 }
  0x24   : > { %s1046_s19 = sshll.u32 %s362_s12, 4  ;;  %s1047_s19 = int_to_ptr.vmem [resolvable:$true] %s1046_s19 }
  0x29   : > { %537 = vperm.xlu0 %1199, %v385_v9  }
  0x2a   : > { %431 = vperm.xlu2 %1198, %v1453_v10   ;;  %426 = vperm.xlu1 %1197, %v1458_v11  }
  0x31   : > { %521 = vperm.xlu0 %1199, %v1453_v10  }
  0x32   : > { %466 = vperm.xlu2 %1198, %v388_v1   ;;  %441 = vperm.xlu1 %1197, %v383_v12  }
  0x39   : > { %501 = vperm.xlu0 %1199, %v1443_v8  }
  0x3a   : > { %1200 = vset.pattern.permute.xlu2 %v1291_v4  ;;  %461 = vperm.xlu1 %1197, %v387_v13  }
  0x3b   : > { %545 = vperm.xlu2 %1200, %v387_v13  }
  0x41   : > { %1215 = vset.pattern.permute.xlu0 %v1292_v5 }
  0x42   : > { %1201 = vset.pattern.permute.xlu1 %v1293_v15  ;;  %391 = vperm.xlu0 %1215, %v1474_v14  }
  0x43   : > { %1202 = vset.pattern.permute.xlu2 %v1292_v5  ;;  %646 = vperm.xlu1 %1201, %v388_v1  }
  0x44   : > { %456 = vperm.xlu2 %1202, %v386_v6  }
  0x4a   : > { %396 = vperm.xlu0 %1215, %v1483_v16  }
  0x4b   : > { %642 = vperm.xlu1 %1201, %v387_v13  }
  0x4c   : > { %451 = vperm.xlu2 %1202, %v385_v9  }
  0x52   : > { %421 = vperm.xlu0 %1215, %v379_v17  }
  0x53   : > { %638 = vperm.xlu1 %1201, %v386_v6  }
  0x54   : > { %775 = vperm.xlu2 %1202, %v697_v18   ;;  %v1026_v18 = vld [vmem:[#allocation2] sm:$0x1] }
  0x5a   : > { %436 = vperm.xlu0 %1215, %v382_v19  }
  0x5b   : > { %1203 = vset.pattern.permute.xlu1 %v1291_v4 }
  0x5c   : > { %1204 = vset.pattern.permute.xlu2 %v1293_v15  ;;  %533 = vperm.xlu1 %1203, %v384_v20  }
  0x5d   : > { %634 = vperm.xlu2 %1204, %v385_v9  }
  0x62   : > { %446 = vperm.xlu0 %1215, %v384_v20  }
  0x64   : > { %1205 = vset.pattern.permute.xlu1 %v1292_v5 }
  0x65   : > { %1206 = vset.pattern.permute.xlu2 %v1291_v4  ;;  %770 = vperm.xlu1 %1205, %v696_v21  }
  0x66   : > { %529 = vperm.xlu2 %1206, %v383_v12  }
  0x6a   : > { %750 = vperm.xlu0 %1215, %v692_v22  }
  0x6d   : > { %765 = vperm.xlu1 %1205, %v695_v23  }
  0x6e   : > { %525 = vperm.xlu2 %1206, %v382_v19  }
  0x72   : > { %725 = vperm.xlu0 %1215, %v687_v24  }
  0x74   : > { %v1514_v25 = vpop.permute.xlu2 %411 }
  0x75   : > { %1207 = vset.pattern.permute.xlu1 %v1293_v15 }
  0x76   : > { %1208 = vset.pattern.permute.xlu2 %v1292_v5  ;;  %626 = vperm.xlu1 %1207, %v383_v12  }
  0x77   : > { %760 = vperm.xlu2 %1208, %v694_v26   ;;  %v685_v26 = vld [vmem:[%s1820_s3 + $0x18] sm:$0xff] }
  0x7a   : > { %1218 = vset.pattern.permute.xlu0 %v1293_v15 }
  0x7b   : > { %630 = vperm.xlu0 %1218, %v384_v20  }
  0x7c   : > { %v1522_v27 = vpop.permute.xlu2 %416 }
  0x7e   : > { %622 = vperm.xlu1 %1207, %v382_v19  }
  0x7f   : > { %755 = vperm.xlu2 %1208, %v693_v28  }
  0x83   : > { %610 = vperm.xlu0 %1218, %v379_v17  }
  0x84   : > { %v432_v29 = vpop.permute.xlu2 %431 }
  0x85   : > { %v480_v46 = vmul.f32 %v1566_v43, %v432_v29 }
  0x86   : > { %1209 = vset.pattern.permute.xlu1 %v1291_v4 }
  0x87   : > { %1210 = vset.pattern.permute.xlu2 %v1293_v15  ;;  %517 = vperm.xlu1 %1209, %v1458_v11  }
  0x88   : > { %618 = vperm.xlu2 %1210, %v1453_v10   ;;  %v990_v10 = vld [vmem:[%s1825_s8 + $0x8] sm:$0xff] }
  0x8b   : > { %v550_v30 = vpop.permute.xlu0 %549  ;;  %590 = vperm.xlu0 %1218, %v1483_v16  }
  0x8c   : > { %v1532_v31 = vpop.permute.xlu1 %401  ;;  %v467_v32 = vpop.permute.xlu2 %466  ;;  %v568_v61 = vmul.f32 %v1570_v44, %v550_v30 }
  0x8d   : > { %v487_v62 = vmul.f32 %v1566_v43, %v467_v32 }
  0x8f   : > { %513 = vperm.xlu1 %1209, %v379_v17   ;;  %v584_v6 = vadd.f32 %v568_v61, %v487_v62 }
  0x90   : > { %614 = vperm.xlu2 %1210, %v1458_v11  }
  0x93   : > { %v1535_v33 = vpop.permute.xlu0 %541  ;;  %1223 = vset.pattern.permute.xlu0 %v1292_v5 }
  0x94   : > { %v407_v34 = vpop.permute.xlu1 %406  ;;  %700 = vperm.xlu0 %1223, %v682_v37   ;;  %v566_v37 = vmul.f32 %v1570_v44, %v1535_v33  ;;  %v683_v33 = vld [vmem:[%s1820_s3 + $0x8] sm:$0xff] }
  0x95   : > { %v1538_v35 = vpop.permute.xlu2 %545  ;;  %v475_v54 = vmul.f32 %v1566_v43, %v407_v34 }
  0x97   : > { %1211 = vset.pattern.permute.xlu1 %v1292_v5 }
  0x98   : > { %1212 = vset.pattern.permute.xlu2 %v1291_v4  ;;  %745 = vperm.xlu1 %1211, %v691_v36  }
  0x99   : > { %509 = vperm.xlu2 %1212, %v1438_v7  }
  0x9b   : > { %v1549_v38 = vpop.permute.xlu0 %537 }
  0x9c   : > { %v1551_v39 = vpop.permute.xlu1 %426  ;;  %843 = vperm.xlu0 %1223, %v821_v42   ;;  %v565_v32 = vmul.f32 %v1570_v44, %v1549_v38 }
  0x9e   : > { %v1556_v41 = vpop.permute.xlu2 %456 }
  0xa0   : > { %740 = vperm.xlu1 %1211, %v690_v40   ;;  %v485_v40 = vmul.f32 %v1566_v43, %v1556_v41 }
  0xa1   : > { %505 = vperm.xlu2 %1212, %v1406_v2  }
  0xa3   : > { %v522_v45 = vpop.permute.xlu0 %521 }
  0xa4   : > { %v561_v47 = vmul.f32 %v1570_v44, %v522_v45  ;;  %v1574_v48 = vpop.permute.xlu1 %441  ;;  %828 = vperm.xlu0 %1223, %v818_v51  }
  0xa6   : > { %v1576_v49 = vadd.f32 %v561_v47, %v480_v46  ;;  %v1578_v50 = vpop.permute.xlu2 %451 }
  0xa7   : > { %v484_v34 = vmul.f32 %v1566_v43, %v1578_v50  ;;  %v582_v50 = vadd.f32 %v566_v37, %v485_v40  ;;  %v922_v37 = vld [vmem:[%s1824_s7 + $0x18] sm:$0xff] }
  0xa8   : > { %1213 = vset.pattern.permute.xlu1 %v1293_v15 }
  0xa9   : > { %1214 = vset.pattern.permute.xlu2 %v1292_v5  ;;  %606 = vperm.xlu1 %1213, %v1438_v7   ;;  %v581_v45 = vadd.f32 %v565_v32, %v484_v34  ;;  %v919_v32 = vld [vmem:[%s1824_s7] sm:$0xff] }
  0xaa   : > { %735 = vperm.xlu2 %1214, %v689_v52  }
  0xab   : > { %v502_v53 = vpop.permute.xlu0 %501 }
  0xac   : > { %v556_v55 = vmul.f32 %v1570_v44, %v502_v53  ;;  %v462_v56 = vpop.permute.xlu1 %461  ;;  %935 = vperm.xlu0 %1223, %v921_v60   ;;  %v824_v60 = vld [vmem:[%s1822_s5 + $0x30] sm:$0xff] }
  0xad   : > { %v486_v24 = vmul.f32 %v1566_v43, %v462_v56  ;;  %v825_v56 = vld [vmem:[%s1822_s5 + $0x38] sm:$0xff] }
  0xae   : > { %v1591_v57 = vadd.f32 %v556_v55, %v475_v54  ;;  %v776_v58 = vpop.permute.xlu2 %775 }
  0xb1   : > { %602 = vperm.xlu1 %1213, %v1406_v2  }
  0xb2   : > { %730 = vperm.xlu2 %1214, %v688_v59  }
  0xb4   : > { %v1605_v0 = vpop.permute.xlu0 %391  ;;  %1000 = vperm.xlu0 %1223, %v990_v10  }
  0xb5   : > { %v647_v1 = vpop.permute.xlu1 %646 }
  0xb6   : > { %v665_v7 = vmul.f32 %v1603_v63, %v647_v1 }
  0xb7   : > { %v635_v9 = vpop.permute.xlu2 %634 }
  0xb8   : > { %v681_v11 = vadd.f32 %v665_v7, %v584_v6  ;;  %v662_v38 = vmul.f32 %v1603_v63, %v635_v9  ;;  %v823_v6 = vld [vmem:[%s1822_s5 + $0x28] sm:$0xff]  ;;  %v482_v7 = vmul.f32 %v1566_v43, %v1574_v48 }
  0xb9   : > { %1216 = vset.pattern.permute.xlu1 %v1291_v4 }
  0xba   : > { %1217 = vset.pattern.permute.xlu2 %v1293_v15  ;;  %497 = vperm.xlu1 %1216, %v1411_v3   ;;  %v793_v2 = vadd.f32 %v776_v58, %v681_v11  ;;  %v678_v51 = vadd.f32 %v662_v38, %v581_v45 }
  0xbb   : > { %598 = vperm.xlu2 %1217, %v1443_v8   ;;  %v686_v8 = vld [vmem:[%s1820_s3 + $0x20] sm:$0xff] }
  0xbc   : > { %v1615_v12 = vpop.permute.xlu0 %396  ;;  %v809_v13 = vmax.f32 %v793_v2, 0.0  ;;  %1029 = vperm.xlu0 %1223, %v1026_v18   ;;  %v822_v2 = vld [vmem:[%s1822_s5 + $0x20] sm:$0xff] }
  0xbd   : > { %v643_v17 = vpop.permute.xlu1 %642 }
  0xbe   : > { %866 = vmatpush.msra.mxu0 %v809_v13  ;;  %1123 = vmatpush.msra.mxu2 %v809_v13  ;;  %v664_v29 = vmul.f32 %v1603_v63, %v643_v17 }
  0xbf   : > { %1124 = vmatpush.msra.mxu3 %v809_v13 }
  0xc0   : > { %v1617_v19 = vpop.permute.xlu2 %529 }
  0xc1   : > { %v563_v62 = vmul.f32 %v1570_v44, %v1617_v19 }
  0xc2   : > { %493 = vperm.xlu1 %1216, %v1483_v16  }
  0xc3   : > { %594 = vperm.xlu2 %1217, %v1411_v3   ;;  %v567_v3 = vmul.f32 %v1570_v44, %v1538_v35  ;;  %v579_v13 = vadd.f32 %v563_v62, %v482_v7 }
  0xc4   : > { %v1621_v20 = vpop.permute.xlu0 %421 }
  0xc5   : > { %v639_v21 = vpop.permute.xlu1 %638 }
  0xc6   : > { %v663_v46 = vmul.f32 %v1603_v63, %v639_v21 }
  0xc8   : > { %v1623_v22 = vpop.permute.xlu2 %525  ;;  %v679_v52 = vadd.f32 %v663_v46, %v582_v50 }
  0xca   : > { %1219 = vset.pattern.permute.xlu1 %v1292_v5 }
  0xcb   : > { %1220 = vset.pattern.permute.xlu2 %v1291_v4  ;;  %720 = vperm.xlu1 %1219, %v686_v8   ;;  %v583_v4 = vadd.f32 %v567_v3, %v486_v24  ;;  %v820_v24 = vld [vmem:[%s1822_s5 + $0x10] sm:$0xff] }
  0xcc   : > { %489 = vperm.xlu2 %1220, %v1474_v14   ;;  %v1631_v23 = vpop.permute.xlu0 %436 }
  0xcd   : > { %v680_v35 = vadd.f32 %v664_v29, %v583_v4  ;;  %v819_v29 = vld [vmem:[%s1822_s5 + $0x8] sm:$0xff] }
  0xce   : > { %v534_v16 = vpop.permute.xlu1 %533 }
  0xcf   : > { %v564_v17 = vmul.f32 %v1570_v44, %v534_v16 }
  0xd1   : > { %v761_v28 = vpop.permute.xlu2 %760 }
  0xd2   : > { %v790_v54 = vadd.f32 %v761_v28, %v678_v51 }
  0xd3   : > { %715 = vperm.xlu1 %1219, %v685_v26  }
  0xd4   : > { %1221 = vset.pattern.permute.xlu2 %v1293_v15  ;;  %v447_v30 = vpop.permute.xlu0 %446  ;;  %v684_v15 = vld [vmem:[%s1820_s3 + $0x10] sm:$0xff]  ;;  %v806_v61 = vmax.f32 %v790_v54, 0.0  ;;  %v478_v54 = vmul.f32 %v1566_v43, %v1621_v20 }
  0xd5   : > { %586 = vperm.xlu2 %1221, %v1474_v14   ;;  %v483_v9 = vmul.f32 %v1566_v43, %v447_v30 }
  0xd7   : > { %v771_v36 = vpop.permute.xlu1 %770  ;;  %v580_v19 = vadd.f32 %v564_v17, %v483_v9 }
  0xd8   : > { %v792_v42 = vadd.f32 %v771_v36, %v680_v35  ;;  %v920_v35 = vld [vmem:[%s1824_s7 + $0x8] sm:$0xff] }
  0xd9   : > { %v756_v14 = vpop.permute.xlu2 %755 }
  0xda   : > { %v808_v47 = vmax.f32 %v792_v42, 0.0  ;;  %v562_v42 = vmul.f32 %v1570_v44, %v1623_v22 }
  0xdb   : > { %710 = vperm.xlu1 %1219, %v684_v15   ;;  %v481_v15 = vmul.f32 %v1566_v43, %v1631_v23  ;;  %v479_v23 = vmul.f32 %v1566_v43, %v1551_v39 }
  0xdc   : > { %867 = vmatpush.msra.mxu0 %v808_v47  ;;  %1125 = vmatpush.msra.mxu2 %v808_v47  ;;  %v751_v41 = vpop.permute.xlu0 %750 }
  0xdd   : > { %1126 = vmatpush.msra.mxu3 %v808_v47  ;;  %1222 = vset.pattern.permute.xlu2 %v1292_v5  ;;  %v578_v38 = vadd.f32 %v562_v42, %v481_v15  ;;  %v991_v47 = vld [vmem:[%s1825_s8 + $0x10] sm:$0xff] }
  0xde   : > { %705 = vperm.xlu2 %1222, %v683_v33  }
  0xdf   : > { %v766_v53 = vpop.permute.xlu1 %765 }
  0xe0   : > { %v791_v55 = vadd.f32 %v766_v53, %v679_v52  ;;  %v992_v52 = vld [vmem:[%s1825_s8 + $0x18] sm:$0xff] }
  0xe2   : > { %v807_v58 = vmax.f32 %v791_v55, 0.0  ;;  %v1662_v59 = vpop.permute.xlu2 %618 }
  0xe3   : > { %863 = vperm.xlu1 %1219, %v825_v56   ;;  %v658_v55 = vmul.f32 %v1603_v63, %v1662_v59 }
  0xe4   : > { %868 = vmatpush.msra.mxu0 %v807_v58  ;;  %1127 = vmatpush.msra.mxu2 %v807_v58  ;;  %v1667_v5 = vpop.permute.xlu0 %725 }
  0xe5   : > { %1128 = vmatpush.msra.mxu3 %v807_v58 }
  0xe6   : > { %858 = vperm.xlu2 %1222, %v824_v60   ;;  %869 = vmatpush.msra.mxu0 %v806_v61 }
  0xe7   : > { %1129 = vmatpush.msra.mxu2 %v806_v61  ;;  %1130 = vmatpush.msra.mxu3 %v806_v61 }
  0xe8   : > { %v627_v1 = vpop.permute.xlu1 %626 }
  0xe9   : > { %v660_v10 = vmul.f32 %v1603_v63, %v627_v1  ;;  %v674_v1 = vadd.f32 %v658_v55, %v1576_v49 }
  0xea   : > { %v615_v11 = vpop.permute.xlu2 %614 }
  0xeb   : > { %853 = vperm.xlu1 %1219, %v823_v6   ;;  %v676_v21 = vadd.f32 %v660_v10, %v579_v13  ;;  %v657_v39 = vmul.f32 %v1603_v63, %v615_v11 }
  0xed   : > { %v631_v18 = vpop.permute.xlu0 %630  ;;  %v788_v28 = vadd.f32 %v751_v41, %v676_v21 }
  0xee   : > { %848 = vperm.xlu2 %1222, %v822_v2   ;;  %v661_v8 = vmul.f32 %v1603_v63, %v631_v18  ;;  %v477_v18 = vmul.f32 %v1566_v43, %v1522_v27 }
  0xef   : > { %v804_v30 = vmax.f32 %v788_v28, 0.0 }
  0xf0   : > { %v677_v48 = vadd.f32 %v661_v8, %v580_v19  ;;  %v623_v3 = vpop.permute.xlu1 %622 }
  0xf1   : > { %v659_v45 = vmul.f32 %v1603_v63, %v623_v3 }
  0xf2   : > { %v789_v26 = vadd.f32 %v756_v14, %v677_v48  ;;  %v989_v14 = vld [vmem:[%s1825_s8] sm:$0xff] }
  0xf3   : > { %838 = vperm.xlu1 %1219, %v820_v24   ;;  %v510_v16 = vpop.permute.xlu2 %509  ;;  %v675_v22 = vadd.f32 %v659_v45, %v578_v38  ;;  %v474_v38 = vmul.f32 %v1566_v43, %v1532_v31 }
  0xf4   : > { %v805_v4 = vmax.f32 %v789_v26, 0.0  ;;  %v558_v11 = vmul.f32 %v1570_v44, %v510_v16 }
  0xf5   : > { %v611_v53 = vpop.permute.xlu0 %610 }
  0xf6   : > { %833 = vperm.xlu2 %1222, %v819_v29   ;;  %870 = vmatpush.msra.mxu0 %v805_v4  ;;  %v656_v61 = vmul.f32 %v1603_v63, %v611_v53  ;;  %v574_v19 = vadd.f32 %v558_v11, %v477_v18 }
  0xf7   : > { %1131 = vmatpush.msra.mxu2 %v805_v4  ;;  %1132 = vmatpush.msra.mxu3 %v805_v4  ;;  %v476_v4 = vmul.f32 %v1566_v43, %v1514_v25 }
  0xf8   : > { %871 = vmatpush.msra.mxu0 %v804_v30 }
  0xf9   : > { %v518_v34 = vpop.permute.xlu1 %517  ;;  %1133 = vmatpush.msra.mxu2 %v804_v30  ;;  %1134 = vmatpush.msra.mxu3 %v804_v30 }
  0xfa   : > { %v560_v33 = vmul.f32 %v1570_v44, %v518_v34 }
  0xfb   : > { %925 = vperm.xlu1 %1219, %v919_v32   ;;  %v1695_v36 = vpop.permute.xlu2 %505 }
  0xfc   : > { %v576_v56 = vadd.f32 %v560_v33, %v479_v23  ;;  %v557_v16 = vmul.f32 %v1570_v44, %v1695_v36  ;;  %v473_v36 = vmul.f32 %v1566_v43, %v1615_v12 }
  0xfe   : > { %930 = vperm.xlu2 %1222, %v920_v35   ;;  %v673_v62 = vadd.f32 %v657_v39, %v576_v56  ;;  %v573_v34 = vadd.f32 %v557_v16, %v476_v4 }
 0x101   : > { %v514_v40 = vpop.permute.xlu1 %513 }
 0x102   : > { %v559_v41 = vmul.f32 %v1570_v44, %v514_v40 }
 0x103   : > { %940 = vperm.xlu1 %1219, %v922_v37  }
 0x104   : > { %v736_v46 = vpop.permute.xlu2 %735  ;;  %v575_v60 = vadd.f32 %v559_v41, %v478_v54  ;;  %v472_v41 = vmul.f32 %v1566_v43, %v1605_v0 }
 0x105   : > { %v785_v20 = vadd.f32 %v736_v46, %v673_v62  ;;  %v591_v46 = vpop.permute.xlu0 %590  ;;  %v810_v62 = vld [vmem:[%s1821_s4] sm:$0xff] }
 0x106   : > { %995 = vperm.xlu2 %1222, %v989_v14   ;;  %v672_v9 = vadd.f32 %v656_v61, %v575_v60  ;;  %v651_v33 = vmul.f32 %v1603_v63, %v591_v46  ;;  %v915_v46 = vld [vmem:[%s1823_s6] sm:$0xff] }
 0x107   : > { %v801_v13 = vmax.f32 %v785_v20, 0.0  ;;  %v813_v20 = vld [vmem:[%s1821_s4 + $0x18] sm:$0xff] }
 0x10a   : > { %v746_v50 = vpop.permute.xlu1 %745 }
 0x10b   : > { %v787_v51 = vadd.f32 %v746_v50, %v675_v22  ;;  %1005 = vperm.xlu1 %1219, %v991_v47  }
 0x10c   : > { %v731_v6 = vpop.permute.xlu2 %730 }
 0x10d   : > { %v803_v58 = vmax.f32 %v787_v51, 0.0  ;;  %v784_v59 = vadd.f32 %v731_v6, %v672_v9  ;;  %v701_v60 = vpop.permute.xlu0 %700  ;;  %v815_v6 = vld [vmem:[%s1821_s4 + $0x28] sm:$0xff]  ;;  %v816_v9 = vld [vmem:[%s1821_s4 + $0x30] sm:$0xff] }
 0x10e   : > { %1010 = vperm.xlu2 %1222, %v992_v52  }
 0x10f   : > { %872 = vmatpush.msra.mxu0 %v803_v58  ;;  %1135 = vmatpush.msra.mxu2 %v803_v58  ;;  %v800_v17 = vmax.f32 %v784_v59, 0.0  ;;  %v817_v59 = vld [vmem:[%s1821_s4 + $0x38] sm:$0xff] }
 0x110   : > { %1136 = vmatpush.msra.mxu3 %v803_v58 }
 0x112   : > { %v741_v7 = vpop.permute.xlu1 %740 }
 0x113   : > { %v786_v10 = vadd.f32 %v741_v7, %v674_v1  ;;  %v812_v1 = vld [vmem:[%s1821_s4 + $0x10] sm:$0xff]  ;;  %v811_v7 = vld [vmem:[%s1821_s4 + $0x8] sm:$0xff] }
 0x115   : > { %v802_v2 = vmax.f32 %v786_v10, 0.0  ;;  %v599_v26 = vpop.permute.xlu2 %598  ;;  %v814_v10 = vld [vmem:[%s1821_s4 + $0x20] sm:$0xff] }
 0x116   : > { %v653_v40 = vmul.f32 %v1603_v63, %v599_v26  ;;  %v844_v26 = vpop.permute.xlu0 %843 }
 0x117   : > { %873 = vmatpush.msra.mxu0 %v802_v2  ;;  %1137 = vmatpush.msra.mxu2 %v802_v2 }
 0x118   : > { %1138 = vmatpush.msra.mxu3 %v802_v2  ;;  %v669_v45 = vadd.f32 %v653_v40, %v1591_v57 }
 0x119   : > { %874 = vmatpush.msra.mxu0 %v801_v13  ;;  %1139 = vmatpush.msra.mxu2 %v801_v13 }
 0x11a   : > { %1140 = vmatpush.msra.mxu3 %v801_v13 }
 0x11b   : > { %v607_v49 = vpop.permute.xlu1 %606  ;;  %875 = vmatpush.msra.mxu0 %v800_v17  ;;  %1141 = vmatpush.msra.mxu2 %v800_v17 }
 0x11c   : > { %v655_v21 = vmul.f32 %v1603_v63, %v607_v49  ;;  %1142 = vmatpush.msra.mxu3 %v800_v17 }
 0x11d   : > { %v595_v29 = vpop.permute.xlu2 %594 }
 0x11e   : > { %v671_v8 = vadd.f32 %v655_v21, %v574_v19  ;;  %v652_v57 = vmul.f32 %v1603_v63, %v595_v29 }
 0x120   : > { %v783_v48 = vadd.f32 %v1667_v5, %v671_v8 }
 0x122   : > { %v799_v3 = vmax.f32 %v783_v48, 0.0 }
 0x123   : > { %v603_v24 = vpop.permute.xlu1 %602 }
 0x124   : > { %876 = vmatpush.msra.mxu0 %v799_v3  ;;  %1143 = vmatpush.msra.mxu2 %v799_v3  ;;  %v654_v30 = vmul.f32 %v1603_v63, %v603_v24 }
 0x125   : > { %1144 = vmatpush.msra.mxu3 %v799_v3 }
 0x126   : > { %v490_v32 = vpop.permute.xlu2 %489  ;;  %v670_v5 = vadd.f32 %v654_v30, %v573_v34 }
 0x127   : > { %v553_v22 = vmul.f32 %v1570_v44, %v490_v32 }
 0x129   : > { %v569_v53 = vadd.f32 %v553_v22, %v472_v41  ;;  %v918_v22 = vld [vmem:[%s1823_s6 + $0x18] sm:$0xff] }
 0x12c   : > { %v498_v28 = vpop.permute.xlu1 %497 }
 0x12d   : > { %v555_v25 = vmul.f32 %v1570_v44, %v498_v28 }
 0x12f   : > { %v587_v14 = vpop.permute.xlu2 %586  ;;  %v571_v51 = vadd.f32 %v555_v25, %v474_v38 }
 0x130   : > { %v650_v12 = vmul.f32 %v1603_v63, %v587_v14  ;;  %v829_v14 = vpop.permute.xlu0 %828 }
 0x131   : > { %v668_v55 = vadd.f32 %v652_v57, %v571_v51 }
 0x132   : > { %v666_v31 = vadd.f32 %v650_v12, %v569_v53 }
 0x134   : > { %v494_v27 = vpop.permute.xlu1 %493  ;;  %v778_v43 = vadd.f32 %v701_v60, %v666_v31 }
 0x135   : > { %v554_v15 = vmul.f32 %v1570_v44, %v494_v27 }
 0x136   : > { %v794_v63 = vmax.f32 %v778_v43, 0.0 }
 0x137   : > { %v570_v50 = vadd.f32 %v554_v15, %v473_v36 }
 0x138   : > { %v706_v56 = vpop.permute.xlu2 %705  ;;  %v936_v12 = vpop.permute.xlu0 %935 }
 0x139   : > { %v667_v54 = vadd.f32 %v651_v33, %v570_v50  ;;  %v917_v33 = vld [vmem:[%s1823_s6 + $0x10] sm:$0xff] }
 0x13b   : > { %v779_v58 = vadd.f32 %v706_v56, %v667_v54 }
 0x13d   : > { %v721_v35 = vpop.permute.xlu1 %720  ;;  %v795_v0 = vmax.f32 %v779_v58, 0.0 }
 0x13e   : > { %v782_v37 = vadd.f32 %v721_v35, %v670_v5 }
 0x140   : > { %v798_v42 = vmax.f32 %v782_v37, 0.0  ;;  %v859_v17 = vpop.permute.xlu2 %858 }
 0x142   : > { %877 = vmatpush.msra.mxu0 %v798_v42  ;;  %1145 = vmatpush.msra.mxu2 %v798_v42 }
 0x143   : > { %1146 = vmatpush.msra.mxu3 %v798_v42 }
 0x145   : > { %v716_v47 = vpop.permute.xlu1 %715 }
 0x146   : > { %v781_v23 = vadd.f32 %v716_v47, %v669_v45  ;;  %v916_v47 = vld [vmem:[%s1823_s6 + $0x8] sm:$0xff] }
 0x148   : > { %v797_v52 = vmax.f32 %v781_v23, 0.0  ;;  %v849_v8 = vpop.permute.xlu2 %848 }
 0x14a   : > { %878 = vmatpush.msra.mxu0 %v797_v52  ;;  %1147 = vmatpush.msra.mxu2 %v797_v52 }
 0x14b   : > { %1148 = vmatpush.msra.mxu3 %v797_v52 }
 0x14d   : > { %v711_v44 = vpop.permute.xlu1 %710 }
 0x14e   : > { %v780_v39 = vadd.f32 %v711_v44, %v668_v55 }
 0x150   : > { %v796_v61 = vmax.f32 %v780_v39, 0.0  ;;  %v834_v40 = vpop.permute.xlu2 %833  ;;  %v1001_v39 = vpop.permute.xlu0 %1000 }
 0x152   : > { %879 = vmatpush.msra.mxu0 %v796_v61  ;;  %1149 = vmatpush.msra.mxu2 %v796_v61 }
 0x153   : > { %1150 = vmatpush.msra.mxu3 %v796_v61 }
 0x154   : > { %880 = vmatpush.msra.mxu0 %v795_v0  ;;  %1151 = vmatpush.msra.mxu2 %v795_v0 }
 0x155   : > { %1152 = vmatpush.msra.mxu3 %v795_v0  ;;  %v864_v11 = vpop.permute.xlu1 %863 }
 0x156   : > { %881 = vmatpush.msra.mxu0 %v794_v63  ;;  %1153 = vmatpush.msra.mxu2 %v794_v63 }
 0x157   : > { %1154 = vmatpush.msra.mxu3 %v794_v63  ;;  %882 = vmatmul.f32.vlgmr.msra.gmra.mxu0 %v810_v62 }
 0x158   : > { %888 = vmatmul.f32.vlgmr.msra.gmra.mxu2 %v812_v1  ;;  %897 = vmatmul.f32.vlgmr.msra.gmra.mxu3 %v815_v6  ;;  %v931_v41 = vpop.permute.xlu2 %930 }
 0x15d   : > { %v854_v19 = vpop.permute.xlu1 %853 }
 0x15f   : > { %885 = vmatmul.f32.gmra.mxu0 %v811_v7 }
 0x160   : > { %891 = vmatmul.f32.gmra.mxu2 %v813_v20  ;;  %900 = vmatmul.f32.gmra.mxu3 %v816_v9  ;;  %v996_v55 = vpop.permute.xlu2 %995 }
 0x165   : > { %v839_v34 = vpop.permute.xlu1 %838 }
 0x168   : > { %894 = vmatmul.f32.gmra.mxu2 %v814_v10  ;;  %903 = vmatmul.f32.gmra.mxu3 %v817_v59  ;;  %v1011_v7 = vpop.permute.xlu2 %1010 }
 0x16d   : > { %v926_v23 = vpop.permute.xlu1 %925 }
 0x175   : > { %v941_v52 = vpop.permute.xlu1 %940 }
 0x17d   : > { %v1006_v61 = vpop.permute.xlu1 %1005 }
 0x1d4   : > { %v883_v21 = vpop.f32.mrf.mxu0 }
 0x1d5   : > { %v884_v36 = vadd.f32 %v883_v21, %v829_v14 }
 0x1d7   : > { %v907_v38 = vmax.f32 %v884_v36, 0.0 }
 0x1db   : > { %v889_v2 = vpop.f32.mrf.mxu2  ;;  %v898_v13 = vpop.f32.mrf.mxu3 }
 0x1dc   : > { %v899_v29 = vadd.f32 %v898_v13, %v854_v19  ;;  %v886_v5 = vpop.f32.mrf.mxu0  ;;  %v890_v35 = vadd.f32 %v889_v2, %v839_v34 }
 0x1dd   : > { %v887_v42 = vadd.f32 %v886_v5, %v834_v40 }
 0x1de   : > { %v912_v30 = vmax.f32 %v899_v29, 0.0  ;;  %v909_v25 = vmax.f32 %v890_v35, 0.0 }
 0x1df   : > { %v908_v45 = vmax.f32 %v887_v42, 0.0 }
 0x1e3   : > { %v892_v18 = vpop.f32.mrf.mxu2  ;;  %v901_v49 = vpop.f32.mrf.mxu3 }
 0x1e4   : > { %v902_v3 = vadd.f32 %v901_v49, %v859_v17  ;;  %v893_v32 = vadd.f32 %v892_v18, %v844_v26  ;;  %v1030_v17 = vpop.permute.xlu0 %1029 }
 0x1e5   : > { %v1032_v49 = vperm.slane %v1030_v17, 0 }
 0x1e6   : > { %v913_v16 = vmax.f32 %v902_v3, 0.0  ;;  %v910_v15 = vmax.f32 %v893_v32, 0.0 }
 0x1eb   : > { %v904_v48 = vpop.f32.mrf.mxu3  ;;  %v895_v28 = vpop.f32.mrf.mxu2 }
 0x1ec   : > { %v905_v24 = vadd.f32 %v904_v48, %v864_v11  ;;  %v896_v4 = vadd.f32 %v895_v28, %v849_v8 }
 0x1ee   : > { %v914_v27 = vmax.f32 %v905_v24, 0.0  ;;  %v911_v37 = vmax.f32 %v896_v4, 0.0 }
 0x1f0   : > { %964 = vmatpush.msra.mxu1 %v914_v27 }
 0x1f2   : > { %965 = vmatpush.msra.mxu1 %v913_v16 }
 0x1f4   : > { %966 = vmatpush.msra.mxu1 %v912_v30 }
 0x1f6   : > { %967 = vmatpush.msra.mxu1 %v911_v37 }
 0x1f8   : > { %968 = vmatpush.msra.mxu1 %v910_v15 }
 0x1fa   : > { %969 = vmatpush.msra.mxu1 %v909_v25 }
 0x1fc   : > { %970 = vmatpush.msra.mxu1 %v908_v45 }
 0x1fe   : > { %971 = vmatpush.msra.mxu1 %v907_v38 }
 0x1ff   : > { %1117 = vmatmul.msk.f32.vlgmr.msra.gmra.mxu1 %vm943_vm0, %v915_v46 }
 0x207   : > { %1118 = vmatmul.msk.f32.gmra.mxu1 %vm943_vm0, %v916_v47 }
 0x20f   : > { %1119 = vmatmul.msk.f32.gmra.mxu1 %vm943_vm0, %v917_v33 }
 0x217   : > { %1120 = vmatmul.msk.f32.gmra.mxu1 %vm943_vm0, %v918_v22 }
 0x27c   : > { %v973_v50 = vpop.f32.mrf.mxu1 }
 0x27d   : > { %v974_v54 = vadd.f32 %v973_v50, %v926_v23 }
 0x27f   : > { %v985_v44 = vmax.f32 %v974_v54, 0.0 }
 0x281   : > { %v1013_v0 = vmul.f32 %v996_v55, %v985_v44 }
 0x284   : > { %v976_v51 = vpop.f32.mrf.mxu1 }
 0x285   : > { %v977_v57 = vadd.f32 %v976_v51, %v931_v41 }
 0x287   : > { %v986_v56 = vmax.f32 %v977_v57, 0.0 }
 0x289   : > { %v1014_v60 = vmul.f32 %v1001_v39, %v986_v56 }
 0x28b   : > { %v1017_v1 = vadd.f32 %v1014_v60, %v1013_v0 }
 0x28c   : > { %v979_v53 = vpop.f32.mrf.mxu1 }
 0x28d   : > { %v980_v31 = vadd.f32 %v979_v53, %v936_v12 }
 0x28f   : > { %v987_v58 = vmax.f32 %v980_v31, 0.0 }
 0x291   : > { %v1015_v63 = vmul.f32 %v1006_v61, %v987_v58 }
 0x293   : > { %v1018_v20 = vadd.f32 %v1017_v1, %v1015_v63 }
 0x294   : > { %v982_v43 = vpop.f32.mrf.mxu1 }
 0x295   : > { %v983_v62 = vadd.f32 %v982_v43, %v941_v52 }
 0x297   : > { %v988_v6 = vmax.f32 %v983_v62, 0.0 }
 0x299   : > { %v1016_v9 = vmul.f32 %v1011_v7, %v988_v6 }
 0x29b   : > { %v1019_v10 = vadd.f32 %v1018_v20, %v1016_v9 }
 0x29d   : > { %v1020_v59 = vrot.slane %v1019_v10, 4 }
 0x29f   : > { %v1021_v2 = vadd.f32 %v1020_v59, %v1019_v10 }
 0x2a1   : > { %v1022_v13 = vrot.slane %v1021_v2, 2 }
 0x2a3   : > { %v1023_v11 = vadd.f32 %v1022_v13, %v1021_v2 }
 0x2a5   : > { %v1024_v18 = vrot.slane %v1023_v11, 1 }
 0x2a7   : > { %v1025_v19 = vadd.f32 %v1024_v18, %v1023_v11 }
 0x2a9   : > { %v1033_v21 = vadd.f32 %v1032_v49, %v1025_v19 }
 0x2ab   : > { %1034 = vst [vmem:[%s362_s12] sm:$0x1] %v1033_v21 }
 0x2ac   : > { %1254 = shalt.err (!%p1251_p3)
}
 0x2ad   : > { %1155 = dma.vmem_to_hbm [thread:$0]  (%p1390_p5), %s1047_s19, 16, %s1049_s13, %s1036_s14  }
 0x2ae PF: > { %p1161_p4 = scmp.ge.s32.totalorder %s1289_s18, 2  ;;  %s1060_s27 = sand.u32 1, %s1277_s15  }
 0x2af   : > { %s1061_s29 = scalar_lea.sflag [#allocation4], %s1060_s27 }
 0x2b0   : > { %p1158_p7 = pnand %p1161_p4, %p1394_p6 }
 0x2b2   : > { %p1159_p8 = pneg %p1158_p7 }
 0x2b4   : > { %1272 = dma.done.wait (%p1159_p8), %s1061_s29, 16  }
 0x2b5   : > { %1274 = vsyncadd (%p1159_p8), %s1061_s29, 4294967280  ;;  %s1833_s30 = sld [smem:[#allocation6_spill]]  ;;  %p22_p9 = scmp.ge.s32.totalorder %s1377_s20, 5  }
 0x2b6   : > { %s1834_s17 = sld [smem:[#allocation7_spill]]  ;;  %s1835_s15 = smov %s1281_s16 }
 0x2b7   : > { %s1837_s18 = smov %s1377_s20  ;;  %24 = sbr.rel (!%p22_p9) target bundleno = 6 (0x6), region = 98 }
 0x2bb   : > { %s1836_s16 = smov %s1833_s30 }
 0x2bc   :  { %1066 = vsyncpa [#allocation4], 1 }
 0x2bd   :  { %1068 = vsyncpa [#allocation4 + $0x1], 1 }

</bundles_post_ra>
